<compile_context>
chip_gen: v5e
topology: v5e:2x2
jax: 0.10.0
libtpu: 0.0.40
codegen_flags: <defaults>
</compile_context>

<pallas_src>
import jax
import jax.numpy as jnp
from jax.experimental import pallas as pl
from jax.experimental.pallas import tpu as pltpu

HIDDEN = 256


def _qnet_kernel(s_ref, a_ref, w1s_ref, w1a_ref, b1_ref, w2_ref, b2_ref,
                 wq_ref, bq_ref, q_ref):
    # Layer 1 with fused concat: relu([s a] @ w1 + b1) == relu(s@w1s + a@w1a + b1)
    x = jnp.dot(s_ref[...], w1s_ref[...], preferred_element_type=jnp.float32)
    x = x + jnp.dot(a_ref[...], w1a_ref[...], preferred_element_type=jnp.float32)
    x = jnp.maximum(x + b1_ref[...], 0.0)
    # Layer 2: (TB, 256) @ (256, 256) + b2 -> ReLU
    x = jnp.dot(x, w2_ref[...], preferred_element_type=jnp.float32)
    x = jnp.maximum(x + b2_ref[...], 0.0)
    # Q head: VPU multiply + lane reduce against the (1, 256) weight row
    # (avoids a <1%-utilized (256, 1) MXU pass).  bq is a scalar in SMEM.
    q = jnp.sum(x * wq_ref[...], axis=-1, keepdims=True) + bq_ref[0, 0]
    q_ref[...] = q.astype(q_ref.dtype)


def qnet_forward(s, a, params, *, block_b=256):
    """Pallas implementation of q_Net.forward.

    s: (B, s_dim) float32, a: (B, a_dim) float32 -> Q: (B, 1) float32
    """
    B, s_dim = s.shape
    a_dim = a.shape[1]
    w1, b1, w2, b2, wq, bq = (params["w1"], params["b1"], params["w2"],
                              params["b2"], params["wq"], params["bq"])
    H = w1.shape[1]

    # One-time weight re-layout outside the kernel (cheap, amortized by jit).
    w1s = w1[:s_dim]               # (s_dim, H)
    w1a = w1[s_dim:]               # (a_dim, H)
    wq_row = wq.reshape(1, H)      # (1, H) row for the VPU head
    bq_s = bq.reshape(1, 1)        # scalar -> SMEM

    # Batch tiling: one tile if the batch is small, otherwise TB-row tiles
    # (pad with zero rows; padded Q rows are sliced off below).
    if B <= block_b:
        tb, b_pad = B, B
        s_p, a_p = s, a
    else:
        tb = block_b
        n_tiles = pl.cdiv(B, tb)
        b_pad = n_tiles * tb
        s_p = jnp.pad(s, ((0, b_pad - B), (0, 0)))
        a_p = jnp.pad(a, ((0, b_pad - B), (0, 0)))
    grid = (b_pad // tb,)

    resident = lambda r, c: pl.BlockSpec((r, c), lambda i: (0, 0))  # stays in VMEM
    batched = lambda c: pl.BlockSpec((tb, c), lambda i: (i, 0))     # per-tile DMA

    flops = 2 * b_pad * ((s_dim + a_dim) * H + H * H + H)
    bytes_accessed = 4 * ((s_dim + a_dim) * H + H * H + 3 * H + 1
                          + b_pad * (s_dim + a_dim + 1))

    q = pl.pallas_call(
        _qnet_kernel,
        out_shape=jax.ShapeDtypeStruct((b_pad, 1), jnp.float32),
        grid=grid,
        in_specs=[
            batched(s_dim),                                        # s tile
            batched(a_dim),                                        # a tile
            resident(s_dim, H),                                    # w1[:s_dim]
            resident(a_dim, H),                                    # w1[s_dim:]
            resident(1, H),                                        # b1
            resident(H, H),                                        # w2
            resident(1, H),                                        # b2
            resident(1, H),                                        # wq row
            pl.BlockSpec(memory_space=pltpu.MemorySpace.SMEM),     # bq scalar
        ],
        out_specs=pl.BlockSpec((tb, 1), lambda i: (i, 0)),
        compiler_params=pltpu.CompilerParams(
            dimension_semantics=("parallel",)),
        cost_estimate=pl.CostEstimate(
            flops=int(flops), transcendentals=0,
            bytes_accessed=int(bytes_accessed)),
    )(s_p, a_p, w1s, w1a, b1, w2, b2, wq_row, bq_s)
    return q[:B]


def init_params(key, s_dim, a_dim, hidden=HIDDEN):
    """Parameter init mirroring the module's layer shapes (noisy=False path).

    Weights stored as (in_features, out_features) so the kernel computes x @ W.
    lQ: orthogonal(0.01) weight, zero bias, as in the PyTorch module.
    """
    d_in = s_dim + a_dim
    k1, k2, k3 = jax.random.split(key, 3)
    w1 = jax.random.normal(k1, (d_in, hidden), jnp.float32) * (1.0 / jnp.sqrt(d_in))
    b1 = jnp.zeros((1, hidden), jnp.float32)
    w2 = jax.random.normal(k2, (hidden, hidden), jnp.float32) * (1.0 / jnp.sqrt(hidden))
    b2 = jnp.zeros((1, hidden), jnp.float32)
    wq = jax.nn.initializers.orthogonal(scale=0.01)(k3, (1, hidden), jnp.float32).T
    bq = jnp.zeros((1, 1), jnp.float32)
    return {"w1": w1, "b1": b1, "w2": w2, "b2": b2, "wq": wq, "bq": bq}


def qnet_reference(s, a, params):
    sa = jnp.concatenate([s, a], axis=1)
    x = jnp.maximum(sa @ params["w1"] + params["b1"], 0.0)
    x = jnp.maximum(x @ params["w2"] + params["b2"], 0.0)
    return x @ params["wq"] + params["bq"]


if __name__ == "__main__":
    key = jax.random.PRNGKey(0)
    k_s, k_a, k_s2, k_a2, k_p = jax.random.split(key, 5)

    s_dim, a_dim = 12, 4
    params = init_params(k_p, s_dim, a_dim)

    # Small batch: single tile (block == full batch).
    s = jax.random.normal(k_s, (4, s_dim), jnp.float32)
    a = jax.random.normal(k_a, (4, a_dim), jnp.float32)
    q_small = jax.block_until_ready(qnet_forward(s, a, params))
    assert q_small.shape == (4, 1)
    assert jnp.allclose(q_small, qnet_reference(s, a, params), atol=1e-4, rtol=1e-4)

    # Larger batch: exercises the batch grid (3 tiles of 256 rows incl. padding).
    s2 = jax.random.normal(k_s2, (600, s_dim), jnp.float32)
    a2 = jax.random.normal(k_a2, (600, a_dim), jnp.float32)
    q_big = jax.block_until_ready(qnet_forward(s2, a2, params))
    assert q_big.shape == (600, 1)
    assert jnp.allclose(q_big, qnet_reference(s2, a2, params), atol=1e-4, rtol=1e-4)

    print("KERNEL_OK")
</pallas_src>

<mosaic_0001>
module attributes {stable_mosaic.version = 11 : i64} {
  func.func @_qnet_kernel(%arg0: i32, %arg1: memref<4x12xf32, #tpu.memory_space<vmem>>, %arg2: memref<4x4xf32, #tpu.memory_space<vmem>>, %arg3: memref<12x256xf32, #tpu.memory_space<vmem>>, %arg4: memref<4x256xf32, #tpu.memory_space<vmem>>, %arg5: memref<1x256xf32, #tpu.memory_space<vmem>>, %arg6: memref<256x256xf32, #tpu.memory_space<vmem>>, %arg7: memref<1x256xf32, #tpu.memory_space<vmem>>, %arg8: memref<1x256xf32, #tpu.memory_space<vmem>>, %arg9: memref<1x1xf32, #tpu.memory_space<smem>>, %arg10: memref<4x1xf32, #tpu.memory_space<vmem>>) attributes {dimension_semantics = [#tpu.dimension_semantics<parallel>], iteration_bounds = array<i64: 1>, scalar_prefetch = 0 : i64, scratch_operands = 0 : i64, tpu.core_type = #tpu.core_type<tc>, window_params = [{transform_indices = @transform_0, window_bounds = array<i64: 4, 12>}, {transform_indices = @transform_1, window_bounds = array<i64: 4, 4>}, {pipeline_mode = #tpu.pipeline_mode<synchronous>, transform_indices = @transform_2, window_bounds = array<i64: 12, 256>}, {pipeline_mode = #tpu.pipeline_mode<synchronous>, transform_indices = @transform_3, window_bounds = array<i64: 4, 256>}, {pipeline_mode = #tpu.pipeline_mode<synchronous>, transform_indices = @transform_4, window_bounds = array<i64: 1, 256>}, {pipeline_mode = #tpu.pipeline_mode<synchronous>, transform_indices = @transform_5, window_bounds = array<i64: 256, 256>}, {pipeline_mode = #tpu.pipeline_mode<synchronous>, transform_indices = @transform_6, window_bounds = array<i64: 1, 256>}, {pipeline_mode = #tpu.pipeline_mode<synchronous>, transform_indices = @transform_7, window_bounds = array<i64: 1, 256>}, {transform_indices = @transform_8, window_bounds = array<i64: 1, 1>}, {transform_indices = @transform_9, window_bounds = array<i64: 4, 1>}]} {
    %c0 = arith.constant 0 : index
    %c0_0 = arith.constant 0 : index
    %0 = vector.load %arg1[%c0, %c0_0] : memref<4x12xf32, #tpu.memory_space<vmem>>, vector<4x12xf32>
    %c0_1 = arith.constant 0 : index
    %c0_2 = arith.constant 0 : index
    %1 = vector.load %arg3[%c0_1, %c0_2] : memref<12x256xf32, #tpu.memory_space<vmem>>, vector<12x256xf32>
    %cst = arith.constant dense<0.000000e+00> : vector<4x256xf32>
    %2 = tpu.matmul %0, %1, %cst {dimension_numbers = #tpu.dot_dimension_numbers<[1], [0], [0], [1], [0, 0, 1, 1], [], []>} : vector<4x12xf32>, vector<12x256xf32>, vector<4x256xf32> -> vector<4x256xf32>
    %c0_3 = arith.constant 0 : index
    %c0_4 = arith.constant 0 : index
    %3 = vector.load %arg2[%c0_3, %c0_4] : memref<4x4xf32, #tpu.memory_space<vmem>>, vector<4x4xf32>
    %c0_5 = arith.constant 0 : index
    %c0_6 = arith.constant 0 : index
    %4 = vector.load %arg4[%c0_5, %c0_6] : memref<4x256xf32, #tpu.memory_space<vmem>>, vector<4x256xf32>
    %cst_7 = arith.constant dense<0.000000e+00> : vector<4x256xf32>
    %5 = tpu.matmul %3, %4, %cst_7 {dimension_numbers = #tpu.dot_dimension_numbers<[1], [0], [0], [1], [0, 0, 1, 1], [], []>} : vector<4x4xf32>, vector<4x256xf32>, vector<4x256xf32> -> vector<4x256xf32>
    %6 = arith.addf %2, %5 : vector<4x256xf32>
    %c0_8 = arith.constant 0 : index
    %c0_9 = arith.constant 0 : index
    %7 = vector.load %arg5[%c0_8, %c0_9] : memref<1x256xf32, #tpu.memory_space<vmem>>, vector<1x256xf32>
    %8 = vector.broadcast %7 : vector<1x256xf32> to vector<4x256xf32>
    %9 = arith.addf %6, %8 : vector<4x256xf32>
    %cst_10 = arith.constant 0.000000e+00 : f32
    %10 = vector.broadcast %cst_10 : f32 to vector<4x256xf32>
    %11 = arith.maximumf %9, %10 : vector<4x256xf32>
    %c0_11 = arith.constant 0 : index
    %c0_12 = arith.constant 0 : index
    %12 = vector.load %arg6[%c0_11, %c0_12] : memref<256x256xf32, #tpu.memory_space<vmem>>, vector<256x256xf32>
    %cst_13 = arith.constant dense<0.000000e+00> : vector<4x256xf32>
    %13 = tpu.matmul %11, %12, %cst_13 {dimension_numbers = #tpu.dot_dimension_numbers<[1], [0], [0], [1], [0, 0, 1, 1], [], []>} : vector<4x256xf32>, vector<256x256xf32>, vector<4x256xf32> -> vector<4x256xf32>
    %c0_14 = arith.constant 0 : index
    %c0_15 = arith.constant 0 : index
    %14 = vector.load %arg7[%c0_14, %c0_15] : memref<1x256xf32, #tpu.memory_space<vmem>>, vector<1x256xf32>
    %15 = vector.broadcast %14 : vector<1x256xf32> to vector<4x256xf32>
    %16 = arith.addf %13, %15 : vector<4x256xf32>
    %cst_16 = arith.constant 0.000000e+00 : f32
    %17 = vector.broadcast %cst_16 : f32 to vector<4x256xf32>
    %18 = arith.maximumf %16, %17 : vector<4x256xf32>
    %c0_17 = arith.constant 0 : index
    %c0_18 = arith.constant 0 : index
    %19 = vector.load %arg8[%c0_17, %c0_18] : memref<1x256xf32, #tpu.memory_space<vmem>>, vector<1x256xf32>
    %20 = vector.broadcast %19 : vector<1x256xf32> to vector<4x256xf32>
    %21 = arith.mulf %18, %20 : vector<4x256xf32>
    %cst_19 = arith.constant dense<0.000000e+00> : vector<4xf32>
    %22 = vector.multi_reduction <add>, %21, %cst_19 [1] : vector<4x256xf32> to vector<4xf32>
    %23 = vector.shape_cast %22 : vector<4xf32> to vector<4x1xf32>
    %c0_20 = arith.constant 0 : index
    %c0_21 = arith.constant 0 : index
    %24 = memref.load %arg9[%c0_20, %c0_21] : memref<1x1xf32, #tpu.memory_space<smem>>
    %25 = vector.broadcast %24 : f32 to vector<4x1xf32>
    %26 = arith.addf %23, %25 : vector<4x1xf32>
    %c0_22 = arith.constant 0 : index
    %c0_23 = arith.constant 0 : index
    %27 = vector.load %arg10[%c0_22, %c0_23] : memref<4x1xf32, #tpu.memory_space<vmem>>, vector<4x1xf32>
    tpu.vector_store %arg10[%c0_22, %c0_23], %26 {strides = array<i32>} : memref<4x1xf32, #tpu.memory_space<vmem>>, vector<4x1xf32>,
    return
  }
  func.func @transform_0(%arg0: i32) -> (i32, i32) {
    %c0_i32 = arith.constant 0 : i32
    %c0_i32_0 = arith.constant 0 : i32
    return %arg0, %c0_i32 : i32, i32
  }
  func.func @transform_1(%arg0: i32) -> (i32, i32) {
    %c0_i32 = arith.constant 0 : i32
    %c0_i32_0 = arith.constant 0 : i32
    return %arg0, %c0_i32 : i32, i32
  }
  func.func @transform_2(%arg0: i32) -> (i32, i32) {
    %c0_i32 = arith.constant 0 : i32
    %c0_i32_0 = arith.constant 0 : i32
    %c0_i32_1 = arith.constant 0 : i32
    return %c0_i32, %c0_i32_0 : i32, i32
  }
  func.func @transform_3(%arg0: i32) -> (i32, i32) {
    %c0_i32 = arith.constant 0 : i32
    %c0_i32_0 = arith.constant 0 : i32
    %c0_i32_1 = arith.constant 0 : i32
    return %c0_i32, %c0_i32_0 : i32, i32
  }
  func.func @transform_4(%arg0: i32) -> (i32, i32) {
    %c0_i32 = arith.constant 0 : i32
    %c0_i32_0 = arith.constant 0 : i32
    %c0_i32_1 = arith.constant 0 : i32
    return %c0_i32, %c0_i32_0 : i32, i32
  }
  func.func @transform_5(%arg0: i32) -> (i32, i32) {
    %c0_i32 = arith.constant 0 : i32
    %c0_i32_0 = arith.constant 0 : i32
    %c0_i32_1 = arith.constant 0 : i32
    return %c0_i32, %c0_i32_0 : i32, i32
  }
  func.func @transform_6(%arg0: i32) -> (i32, i32) {
    %c0_i32 = arith.constant 0 : i32
    %c0_i32_0 = arith.constant 0 : i32
    %c0_i32_1 = arith.constant 0 : i32
    return %c0_i32, %c0_i32_0 : i32, i32
  }
  func.func @transform_7(%arg0: i32) -> (i32, i32) {
    %c0_i32 = arith.constant 0 : i32
    %c0_i32_0 = arith.constant 0 : i32
    %c0_i32_1 = arith.constant 0 : i32
    return %c0_i32, %c0_i32_0 : i32, i32
  }
  func.func @transform_8(%arg0: i32) -> (i32, i32) {
    %c0_i32 = arith.constant 0 : i32
    %c0_i32_0 = arith.constant 0 : i32
    %c0_i32_1 = arith.constant 0 : i32
    return %c0_i32, %c0_i32_0 : i32, i32
  }
  func.func @transform_9(%arg0: i32) -> (i32, i32) {
    %c0_i32 = arith.constant 0 : i32
    %c0_i32_0 = arith.constant 0 : i32
    return %arg0, %c0_i32 : i32, i32
  }
}

</mosaic_0001>

<bundles_post_ra>
// kernel: tpu_custom_call.1
= control target key start
LH: loop header
LB: loop body
LE: loop exit
PB: predicated region body
PF: predicated region fallthrough
CT: control target
= control target key end

     0   :  { %15 = vsyncpa [#allocation4], 0  ;;  %s636_s0 = inlined_call_operand.hbm [shape: f32[4,12], index: 0, kind: input, shape index: {}]   ;;  %s637_s1 = inlined_call_operand.hbm [shape: f32[4,4], index: 1, kind: input, shape index: {}]   ;;  %s638_s2 = inlined_call_operand.hbm [shape: f32[12,256], index: 2, kind: input, shape index: {}]   ;;  %s639_s3 = inlined_call_operand.hbm [shape: f32[4,256], index: 3, kind: input, shape index: {}]   ;;  %s640_s4 = inlined_call_operand.vmem [shape: f32[1,256], index: 4, kind: input, shape index: {}]   ;;  %s641_s5 = inlined_call_operand.hbm [shape: f32[256,256], index: 5, kind: input, shape index: {}]   ;;  %s642_s6 = inlined_call_operand.vmem [shape: f32[1,256], index: 6, kind: input, shape index: {}]   ;;  %s643_s7 = inlined_call_operand.vmem [shape: f32[1,256], index: 7, kind: input, shape index: {}]   ;;  %s644_s8 = inlined_call_operand.<no memory space> [shape: f32[1,1], index: 8, kind: input, shape index: {}]   ;;  %s645_s9 = inlined_call_operand.vmem [shape: f32[4,1], index: 9, kind: output, shape index: {}]  }
   0x1   :  { %16 = vsyncpa [#allocation6], 0  ;;  %s34_s11 = sshll.u32 %s637_s1, 4  ;;  %s35_s11 = int_to_ptr.hbm [resolvable:$true] %s34_s11 }
   0x2   :  { %17 = vsyncpa [#allocation9], 0  ;;  %s543_s12 = smov [#allocation5]   ;;  %s58_s16 = sshll.u32 %s639_s3, 4  ;;  %s59_s16 = int_to_ptr.hbm [resolvable:$true] %s58_s16 }
   0x3   :  { %s36_s13 = sshll.u32 %s543_s12, 4  ;;  %s544_s17 = smov [#allocation8]   ;;  %s37_s13 = int_to_ptr.vmem [resolvable:$true] %s36_s13 }
   0x4   :  { %39 = dma.hbm_to_vmem [thread:$0]  %s35_s11, 64, %s37_s13, [#allocation6]  }
   0x5   :  { %s60_s18 = sshll.u32 %s544_s17, 4  ;;  %s23_s21 = sshll.u32 %s636_s0, 4  ;;  %s61_s18 = int_to_ptr.vmem [resolvable:$true] %s60_s18  ;;  %s24_s21 = int_to_ptr.hbm [resolvable:$true] %s23_s21 }
   0x6   :  { %63 = dma.hbm_to_vmem [thread:$0]  %s59_s16, 128, %s61_s18, [#allocation9]  }
   0x7   :  { %s44_s23 = sshll.u32 %s638_s2, 4  ;;  %s545_s24 = smov [#allocation3]   ;;  %s45_s23 = int_to_ptr.hbm [resolvable:$true] %s44_s23 }
   0x8   :  { %s25_s25 = sshll.u32 %s545_s24, 4  ;;  %s546_s3 = smov [#allocation7]   ;;  %s26_s25 = int_to_ptr.vmem [resolvable:$true] %s25_s25 }
   0x9   :  { %28 = dma.hbm_to_vmem [thread:$0]  %s24_s21, 64, %s26_s25, [#allocation4]  }
   0xa   :  { %s46_s26 = sshll.u32 %s546_s3, 4  ;;  %s547_s27 = smov 256   ;;  %s47_s26 = int_to_ptr.vmem [resolvable:$true] %s46_s26 }
   0xb   :  { %s548_s28 = smov 16   ;;  %s70_s30 = sshll.u32 %s641_s5, 4  ;;  %s71_s30 = int_to_ptr.hbm [resolvable:$true] %s70_s30 }
   0xc   :  { %52 = dma.hbm_to_vmem [thread:$0]  %s45_s23, 512, %s47_s26, [#allocation6], %s547_s27, %s547_s27, %s548_s28  }
   0xd   :  { %s549_s10 = smov [#allocation10]  }
   0xe   :  { %s72_s11 = sshll.u32 %s549_s10, 4  ;;  %s73_s11 = int_to_ptr.vmem [resolvable:$true] %s72_s11 }
   0xf   :  { %78 = dma.hbm_to_vmem [thread:$0]  %s71_s30, 8192, %s73_s11, [#allocation9], %s547_s27, %s547_s27, %s548_s28  }
  0x10   :  { %537 = dma.done.wait [#allocation4], 64  }
  0x11   :  { %538 = vsyncadd [#allocation4], 4294967232 }
  0x12   :  { %539 = dma.done.wait [#allocation6], 576  }
  0x13   :  { %540 = vsyncadd [#allocation6], 4294966720 }
  0x14   :  { %541 = dma.done.wait [#allocation9], 8320  }
  0x15   :  { %542 = vsyncadd [#allocation9], 4294958976  ;;  %vm120_vm0 = vcmask 1043456   ;;  %v108_v0 = vld [vmem:[#allocation7 + $0x10] sm:$0xf]  ;;  %v106_v1 = vld [vmem:[#allocation7] sm:$0xff] }
  0x16   :  { %v109_v2 = vld [vmem:[#allocation7 + $0x18] sm:$0xf]  ;;  %406 = vmatpush.msk.msra.mxu2 %vm120_vm0, %v108_v0  ;;  %vm165_vm1 = vcmask 97280   ;;  %v107_v4 = vld [vmem:[#allocation7 + $0x8] sm:$0xff]  ;;  %v111_v5 = vld [vmem:[#allocation8] sm:$0xff]  ;;  %vm116_vm2 = vcmask 31744  }
  0x17   :  { %408 = vmatpush.msk.msra.mxu3 %vm120_vm0, %v109_v2  ;;  %v105_v3 = vld [vmem:[#allocation3] sm:$0xf]  ;;  %113 = vst [vmem:[#allocation1] ss:$2 sm:$0xff] %v111_v5  ;;  %v256_v6 = vld [vmem:[#allocation10 + $0xf8] sm:$0xff]  ;;  %v254_v7 = vld [vmem:[#allocation10 + $0xe8] sm:$0xff] }
  0x18   :  { %190 = vmatpush.msra.mxu2 %v106_v1  ;;  %v288_v8 = vld [vmem:[#allocation10 + $0x1f8] sm:$0xff]  ;;  %v286_v9 = vld [vmem:[#allocation10 + $0x1e8] sm:$0xff]  ;;  %v110_v12 = vld [vmem:[#allocation5] sm:$0xf]  ;;  %vm393_vm3 = vcmask 3072  }
  0x19   :  { %210 = vmatpush.msra.mxu3 %v107_v4  ;;  %407 = vmatmul.msk.f32.vlgmr.msra.gmra.mxu2 %vm165_vm1, %v105_v3  ;;  %v252_v10 = vld [vmem:[#allocation10 + $0xd8] sm:$0xff]  ;;  %v255_v13 = vld [vmem:[#allocation10 + $0xf0] sm:$0xff]  ;;  %v250_v17 = vld [vmem:[#allocation10 + $0xc8] sm:$0xff] }
  0x1a   :  { %409 = vmatmul.msk.f32.vlgmr.msra.gmra.mxu3 %vm165_vm1, %v105_v3  ;;  %335 = vmatpush.msrb.mxu2 %v256_v6  ;;  %v284_v11 = vld [vmem:[#allocation10 + $0x1d8] sm:$0xff]  ;;  %v287_v14 = vld [vmem:[#allocation10 + $0x1f0] sm:$0xff]  ;;  %v282_v18 = vld [vmem:[#allocation10 + $0x1c8] sm:$0xff] }
  0x1b   :  { %355 = vmatpush.msrb.mxu3 %v288_v8  ;;  %v253_v19 = vld [vmem:[#allocation10 + $0xe0] sm:$0xff]  ;;  %v248_v21 = vld [vmem:[#allocation10 + $0xb8] sm:$0xff]  ;;  %v251_v23 = vld [vmem:[#allocation10 + $0xd0] sm:$0xff] }
  0x1c   :  { %336 = vmatpush.msrb.mxu2 %v254_v7  ;;  %v285_v20 = vld [vmem:[#allocation10 + $0x1e0] sm:$0xff]  ;;  %v280_v22 = vld [vmem:[#allocation10 + $0x1b8] sm:$0xff]  ;;  %v283_v24 = vld [vmem:[#allocation10 + $0x1d0] sm:$0xff] }
  0x1d   :  { %356 = vmatpush.msrb.mxu3 %v286_v9  ;;  %v246_v25 = vld [vmem:[#allocation10 + $0xa8] sm:$0xff]  ;;  %v249_v27 = vld [vmem:[#allocation10 + $0xc0] sm:$0xff]  ;;  %v244_v29 = vld [vmem:[#allocation10 + $0x98] sm:$0xff] }
  0x1e   :  { %v114_v15 = vld.sshfl [vmem:[#allocation1] sm:$0xff pattern:$0x75316420]  ;;  %v115_v16 = vld.sshfl [vmem:[#allocation1 + $0x8] sm:$0xff pattern:$0x75316420]  ;;  %337 = vmatpush.msrb.mxu2 %v252_v10 }
  0x1f   :  { %357 = vmatpush.msrb.mxu3 %v284_v11  ;;  %402 = vmatpush.msk.msra.mxu0 %vm120_vm0, %v114_v15  ;;  %v278_v26 = vld [vmem:[#allocation10 + $0x1a8] sm:$0xff]  ;;  %v281_v28 = vld [vmem:[#allocation10 + $0x1c0] sm:$0xff]  ;;  %v276_v30 = vld [vmem:[#allocation10 + $0x198] sm:$0xff] }
  0x20   :  { %404 = vmatpush.msk.msra.mxu1 %vm120_vm0, %v115_v16  ;;  %403 = vmatmul.msk.f32.vlgmr.msra.gmra.mxu0 %vm116_vm2, %v110_v12  ;;  %v247_v31 = vld [vmem:[#allocation10 + $0xb0] sm:$0xff]  ;;  %v242_v33 = vld [vmem:[#allocation10 + $0x88] sm:$0xff]  ;;  %v245_v35 = vld [vmem:[#allocation10 + $0xa0] sm:$0xff] }
  0x21   :  { %405 = vmatmul.msk.f32.vlgmr.msra.gmra.mxu1 %vm116_vm2, %v110_v12  ;;  %295 = vmatpush.msrb.mxu0 %v255_v13  ;;  %v279_v32 = vld [vmem:[#allocation10 + $0x1b0] sm:$0xff]  ;;  %v274_v34 = vld [vmem:[#allocation10 + $0x188] sm:$0xff]  ;;  %v277_v36 = vld [vmem:[#allocation10 + $0x1a0] sm:$0xff] }
  0x22   :  { %315 = vmatpush.msrb.mxu1 %v287_v14  ;;  %338 = vmatpush.msrb.mxu2 %v250_v17  ;;  %v240_v37 = vld [vmem:[#allocation10 + $0x78] sm:$0xff]  ;;  %v243_v39 = vld [vmem:[#allocation10 + $0x90] sm:$0xff]  ;;  %v238_v41 = vld [vmem:[#allocation10 + $0x68] sm:$0xff] }
  0x23   :  { %358 = vmatpush.msrb.mxu3 %v282_v18  ;;  %296 = vmatpush.msrb.mxu0 %v253_v19  ;;  %v272_v38 = vld [vmem:[#allocation10 + $0x178] sm:$0xff]  ;;  %v275_v40 = vld [vmem:[#allocation10 + $0x190] sm:$0xff]  ;;  %v270_v42 = vld [vmem:[#allocation10 + $0x168] sm:$0xff] }
  0x24   :  { %316 = vmatpush.msrb.mxu1 %v285_v20  ;;  %339 = vmatpush.msrb.mxu2 %v248_v21  ;;  %v241_v43 = vld [vmem:[#allocation10 + $0x80] sm:$0xff]  ;;  %v236_v45 = vld [vmem:[#allocation10 + $0x58] sm:$0xff]  ;;  %v239_v47 = vld [vmem:[#allocation10 + $0x70] sm:$0xff] }
  0x25   :  { %359 = vmatpush.msrb.mxu3 %v280_v22  ;;  %297 = vmatpush.msrb.mxu0 %v251_v23  ;;  %v273_v44 = vld [vmem:[#allocation10 + $0x180] sm:$0xff]  ;;  %v268_v46 = vld [vmem:[#allocation10 + $0x158] sm:$0xff]  ;;  %v271_v48 = vld [vmem:[#allocation10 + $0x170] sm:$0xff] }
  0x26   :  { %317 = vmatpush.msrb.mxu1 %v283_v24  ;;  %340 = vmatpush.msrb.mxu2 %v246_v25  ;;  %v234_v49 = vld [vmem:[#allocation10 + $0x48] sm:$0xff]  ;;  %v237_v50 = vld [vmem:[#allocation10 + $0x60] sm:$0xff]  ;;  %v235_v52 = vld [vmem:[#allocation10 + $0x50] sm:$0xff] }
  0x27   :  { %360 = vmatpush.msrb.mxu3 %v278_v26  ;;  %298 = vmatpush.msrb.mxu0 %v249_v27  ;;  %v269_v51 = vld [vmem:[#allocation10 + $0x160] sm:$0xff]  ;;  %v267_v53 = vld [vmem:[#allocation10 + $0x150] sm:$0xff]  ;;  %v232_v57 = vld [vmem:[#allocation10 + $0x38] sm:$0xff] }
  0x28   :  { %318 = vmatpush.msrb.mxu1 %v281_v28  ;;  %341 = vmatpush.msrb.mxu2 %v244_v29  ;;  %v233_v54 = vld [vmem:[#allocation10 + $0x40] sm:$0xff]  ;;  %v231_v55 = vld [vmem:[#allocation10 + $0x30] sm:$0xff]  ;;  %v266_v58 = vld [vmem:[#allocation10 + $0x148] sm:$0xff] }
  0x29   :  { %361 = vmatpush.msrb.mxu3 %v276_v30  ;;  %299 = vmatpush.msrb.mxu0 %v247_v31  ;;  %v265_v56 = vld [vmem:[#allocation10 + $0x140] sm:$0xff]  ;;  %v263_v60 = vld [vmem:[#allocation10 + $0x130] sm:$0xff]  ;;  %v230_v61 = vld [vmem:[#allocation10 + $0x28] sm:$0xff] }
  0x2a   :  { %319 = vmatpush.msrb.mxu1 %v279_v32  ;;  %342 = vmatpush.msrb.mxu2 %v242_v33  ;;  %v229_v59 = vld [vmem:[#allocation10 + $0x20] sm:$0xff]  ;;  %v264_v62 = vld [vmem:[#allocation10 + $0x138] sm:$0xff]  ;;  %v227_v63 = vld [vmem:[#allocation10 + $0x10] sm:$0xff] }
  0x2b   :  { %362 = vmatpush.msrb.mxu3 %v274_v34  ;;  %300 = vmatpush.msrb.mxu0 %v245_v35  ;;  %v261_v0 = vld [vmem:[#allocation10 + $0x120] sm:$0xff]  ;;  %v228_v1 = vld [vmem:[#allocation10 + $0x18] sm:$0xff]  ;;  %v262_v2 = vld [vmem:[#allocation10 + $0x128] sm:$0xff] }
  0x2c   :  { %320 = vmatpush.msrb.mxu1 %v277_v36  ;;  %343 = vmatpush.msrb.mxu2 %v240_v37  ;;  %v225_v3 = vld [vmem:[#allocation10] sm:$0xff]  ;;  %v259_v4 = vld [vmem:[#allocation10 + $0x110] sm:$0xff]  ;;  %v226_v5 = vld [vmem:[#allocation10 + $0x8] sm:$0xff] }
  0x2d   :  { %363 = vmatpush.msrb.mxu3 %v272_v38  ;;  %301 = vmatpush.msrb.mxu0 %v243_v39  ;;  %v260_v6 = vld [vmem:[#allocation10 + $0x118] sm:$0xff]  ;;  %v257_v7 = vld [vmem:[#allocation10 + $0x100] sm:$0xff]  ;;  %v258_v8 = vld [vmem:[#allocation10 + $0x108] sm:$0xff] }
  0x2e   :  { %321 = vmatpush.msrb.mxu1 %v275_v40  ;;  %344 = vmatpush.msrb.mxu2 %v238_v41  ;;  %v215_v9 = vld [vmem:[%s640_s4] sm:$0x3] }
  0x2f   :  { %364 = vmatpush.msrb.mxu3 %v270_v42  ;;  %302 = vmatpush.msrb.mxu0 %v241_v43  ;;  %v217_v11 = vperm.slane %v215_v9, 0  ;;  %v218_v13 = vperm.slane %v215_v9, 1  ;;  %v289_v22 = vld [vmem:[%s642_s6] sm:$0x3]  ;;  %v391_v43 = vstv %s644_s8 }
  0x30   :  { %322 = vmatpush.msrb.mxu1 %v273_v44  ;;  %345 = vmatpush.msrb.mxu2 %v236_v45  ;;  %v291_v23 = vperm.slane %v289_v22, 0  ;;  %v292_v28 = vperm.slane %v289_v22, 1  ;;  %v377_v29 = vld [vmem:[%s643_s7] sm:$0x3] }
  0x31   :  { %365 = vmatpush.msrb.mxu3 %v268_v46  ;;  %303 = vmatpush.msrb.mxu0 %v239_v47  ;;  %v379_v34 = vperm.slane %v377_v29, 0  ;;  %v380_v36 = vperm.slane %v377_v29, 1 }
  0x32   :  { %323 = vmatpush.msrb.mxu1 %v271_v48  ;;  %346 = vmatpush.msrb.mxu2 %v234_v49 }
  0x33   :  { %304 = vmatpush.msrb.mxu0 %v237_v50  ;;  %366 = vmatpush.msrb.mxu3 %v266_v58 }
  0x34   :  { %324 = vmatpush.msrb.mxu1 %v269_v51  ;;  %347 = vmatpush.msrb.mxu2 %v232_v57 }
  0x35   :  { %305 = vmatpush.msrb.mxu0 %v235_v52  ;;  %367 = vmatpush.msrb.mxu3 %v264_v62 }
  0x36   :  { %325 = vmatpush.msrb.mxu1 %v267_v53  ;;  %348 = vmatpush.msrb.mxu2 %v230_v61 }
  0x37   :  { %306 = vmatpush.msrb.mxu0 %v233_v54  ;;  %368 = vmatpush.msrb.mxu3 %v262_v2 }
  0x38   :  { %326 = vmatpush.msrb.mxu1 %v265_v56  ;;  %349 = vmatpush.msrb.mxu2 %v228_v1 }
  0x39   :  { %307 = vmatpush.msrb.mxu0 %v231_v55  ;;  %369 = vmatpush.msrb.mxu3 %v260_v6 }
  0x3a   :  { %327 = vmatpush.msrb.mxu1 %v263_v60  ;;  %350 = vmatpush.msrb.mxu2 %v226_v5 }
  0x3b   :  { %308 = vmatpush.msrb.mxu0 %v229_v59  ;;  %370 = vmatpush.msrb.mxu3 %v258_v8 }
  0x3c   :  { %328 = vmatpush.msrb.mxu1 %v261_v0 }
  0x3d   :  { %309 = vmatpush.msrb.mxu0 %v227_v63 }
  0x3e   :  { %329 = vmatpush.msrb.mxu1 %v259_v4 }
  0x3f   :  { %310 = vmatpush.msrb.mxu0 %v225_v3 }
  0x40   :  { %330 = vmatpush.msrb.mxu1 %v257_v7 }
  0x9c   :  { %v192_v10 = vpop.f32.mrf.mxu2 }
  0x9d   :  { %v212_v12 = vpop.f32.mrf.mxu3  ;;  %v142_v14 = vpop.f32.mrf.mxu0 }
  0x9e   :  { %v162_v15 = vpop.f32.mrf.mxu1  ;;  %v193_v16 = vadd.f32 %v192_v10, %v142_v14 }
  0x9f   :  { %v213_v17 = vadd.f32 %v212_v12, %v162_v15 }
  0xa0   :  { %v221_v18 = vadd.f32 %v217_v11, %v193_v16 }
  0xa1   :  { %v222_v19 = vadd.f32 %v218_v13, %v213_v17 }
  0xa2   :  { %v223_v20 = vmax.f32 %v221_v18, 0.0 }
  0xa3   :  { %v224_v21 = vmax.f32 %v222_v19, 0.0 }
  0xa4   :  { %311 = vmatmul.f32.vlgmr.msrb.gmra.mxu0 %v223_v20  ;;  %351 = vmatmul.f32.vlgmr.msrb.gmra.mxu2 %v223_v20 }
  0xa5   :  { %331 = vmatmul.f32.vlgmr.msrb.gmra.mxu1 %v224_v21  ;;  %371 = vmatmul.f32.vlgmr.msrb.gmra.mxu3 %v224_v21 }
 0x121   :  { %v312_v24 = vpop.f32.mrf.mxu0 }
 0x122   :  { %v313_v25 = vadd.f32 %v312_v24, %v291_v23  ;;  %v332_v26 = vpop.f32.mrf.mxu1 }
 0x124   :  { %v333_v27 = vadd.f32 %v332_v26, %v313_v25 }
 0x126   :  { %v375_v31 = vmax.f32 %v333_v27, 0.0 }
 0x127   :  { %v352_v30 = vpop.f32.mrf.mxu2 }
 0x128   :  { %v353_v32 = vadd.f32 %v352_v30, %v292_v28  ;;  %v372_v33 = vpop.f32.mrf.mxu3  ;;  %v383_v38 = vmul.f32 %v379_v34, %v375_v31 }
 0x12a   :  { %v373_v35 = vadd.f32 %v372_v33, %v353_v32  ;;  %v385_v40 = vsel %vm120_vm0, %v383_v38, 0.0 }
 0x12c   :  { %v376_v37 = vmax.f32 %v373_v35, 0.0 }
 0x12e   :  { %v384_v39 = vmul.f32 %v380_v36, %v376_v37 }
 0x130   :  { %v386_v41 = vsel %vm120_vm0, %v384_v39, 0.0 }
 0x131   :  { %v387_v42 = vadd.f32 %v386_v41, %v385_v40 }
 0x133   :  { %388 = vadd.xlane.f32.xlu0 %v387_v42 }
 0x1a6   :  { %v389_v44 = vpop.xlane.xlu0 %388 }
 0x1a7   :  { %v392_v45 = vadd.f32 %v391_v43, %v389_v44 }
 0x1a9   :  { %394 = vst.msk [vmem:[%s645_s9] sm:$0xf] %vm393_vm3, %v392_v45 }
 0x1aa   :  { %399 = vsyncpa [#allocation4], 1 }
 0x1ab   :  { %400 = vsyncpa [#allocation6], 1 }
 0x1ac   :  { %401 = vsyncpa [#allocation9], 1 }

</bundles_post_ra>
